<compile_context>
chip_gen: v5e
topology: v5e:2x2
jax: 0.10.0
libtpu: 0.0.40
codegen_flags: <defaults>
</compile_context>

<pallas_src>
import jax
import jax.numpy as jnp
from jax.experimental import pallas as pl
from jax.experimental.pallas import tpu as pltpu

HIDDEN_PER_HEAD = 64
FUSED_HIDDEN = 2 * HIDDEN_PER_HEAD  # 128 -> exactly one vreg lane width
_LANE = 128
_MIN_ROWS_PER_CORE = 512            # don't shard tiny batches across megacore TCs


def _softplus(x):
    # Numerically stable softplus (matches torch.nn.Softplus to f32 tolerance).
    # NOTE: on v6e/v7x the exp/log1p could be done in bf16 on the EUP for ~2x
    # transcendental throughput, but that risks the 1e-5 tolerance; keep f32.
    return jnp.maximum(x, 0.0) + jnp.log1p(jnp.exp(-jnp.abs(x)))


def advantage_critic_kernel(emb_ref, act_ref,
                            w1e_ref, w1a_ref, b1_ref, w2row_ref, b2_ref,
                            out_ref):
    # int32 -> f32 cast done here (VPU) instead of as a separate XLA op.
    act = act_ref[...].astype(jnp.float32)

    # First layer of BOTH heads as one 128-wide matmul, K split between the
    # embedding part and the action part (embedding bytes streamed once).
    h = (jnp.dot(emb_ref[...], w1e_ref[...], preferred_element_type=jnp.float32)
         + jnp.dot(act, w1a_ref[...], preferred_element_type=jnp.float32)
         + b1_ref[...])
    h = _softplus(h)                                  # VPU + EUP

    # Second layer WITHOUT the MXU: multiply by the broadcast (1,128) second-layer
    # weight row (lanes 0:64 = state head w2, 64:128 = action head w2), then two
    # masked full-lane reductions (XLU).  MXU push count for an N=2 matmul would
    # have been the same as the 128-wide matmul above -- this keeps MXU free.
    hw = h * w2row_ref[...]                           # (TB, 128) VPU
    lane = jax.lax.broadcasted_iota(jnp.int32, hw.shape, 1)
    is_state = lane < HIDDEN_PER_HEAD
    sv = jnp.sum(jnp.where(is_state, hw, 0.0), axis=-1, keepdims=True)   # (TB, 1)
    av = jnp.sum(jnp.where(is_state, 0.0, hw), axis=-1, keepdims=True)   # (TB, 1)

    # Pack into the lane-dense (TB, 2) output slab: col 0 = state, col 1 = action.
    col = jax.lax.broadcasted_iota(jnp.int32, out_ref.shape, 1)
    out_ref[...] = (jnp.where(col == 0, sv, av) + b2_ref[...]).astype(out_ref.dtype)


def pack_params(params, embedding_dim, action_dim, hidden=HIDDEN_PER_HEAD):
    """Fuse the two per-head MLPs into one 128-wide MLP.

    NOTE: assumes the action-head Linear was trained on input ordered
    [embedding, action] (exactly what the torch module's torch.cat produces);
    rows 0:E of w1a are the embedding part, rows E: are the action part.

    Returns (w1_emb, w1_act, b1, w2_row, b2):
      w1_emb : (E, 2H)  cols 0:H = state-head W1, cols H:2H = action-head W1[:E]
      w1_act : (A, 2H)  cols 0:H = ZERO (state head ignores action), H:2H = W1a[E:]
      b1     : (1, 2H)
      w2_row : (1, 2H)  lanes 0:H = state-head w2 column, H:2H = action-head w2 column
      b2     : (1, 2)
    """
    (w1s, b1s, w2s, b2s, w1a, b1a, w2a, b2a) = params
    E, A, H = embedding_dim, action_dim, hidden
    assert w1s.shape == (E, H) and w1a.shape == (E + A, H), (
        "action-head W1 must take input ordered [embedding, action]")

    w1_emb = jnp.concatenate([w1s, w1a[:E, :]], axis=1)
    w1_act = jnp.concatenate([jnp.zeros((A, H), jnp.float32), w1a[E:, :]], axis=1)
    b1 = jnp.concatenate([b1s, b1a], axis=1)
    w2_row = jnp.concatenate([w2s.T, w2a.T], axis=1)       # (1, 2H)
    b2 = jnp.concatenate([b2s, b2a], axis=1)               # (1, 2)
    return (w1_emb, w1_act, b1, w2_row, b2)


def _chip_defaults():
    """(max_batch_tile_rows, tensorcores_per_chip) for the attached TPU generation.

    Caps keep the lane-padded per-tile working set (~3.5 KB/row with double
    buffering) inside the default scoped VMEM limit of each generation:
      v5e  : 16 MiB default scoped  -> cap 2048 (~7 MB)
      v6e  : 32 MiB default scoped  -> cap 4096 (~14 MB)
      v7x  : 32 MiB default / 64 MiB physical -> cap 4096, and 2 TCs per chip.
    """
    try:
        kind = jax.devices()[0].device_kind.lower()
    except Exception:
        kind = ""
    if "v7" in kind:
        return 4096, 2
    if "v5p" in kind or "v4" in kind:
        return 4096, 2          # other megacore generations
    if "v5" in kind:            # v5e / v5 lite
        return 2048, 1
    return 4096, 1              # v6e and unknown


def _select_batch_tile(B, batch_tile=None):
    """Pick the batch tile: as large as the per-generation VMEM cap allows, with a
    grid length that is a multiple of the TensorCore count on megacore chips."""
    cap, n_cores = _chip_defaults()
    if batch_tile is not None:
        cap = batch_tile
    n_tiles = pl.cdiv(B, cap)
    if n_cores > 1 and (n_tiles > 1 or B >= n_cores * _MIN_ROWS_PER_CORE):
        n_tiles = max(n_tiles, n_cores)
        n_tiles = ((n_tiles + n_cores - 1) // n_cores) * n_cores
    if n_tiles <= 1:
        return B
    tb = -(-B // n_tiles)            # cdiv
    return ((tb + 7) // 8) * 8       # sublane-align


def advantage_critic_forward(embedding, action, fused_params, *, batch_tile=None):
    """Returns (state_value, action_value), each (B, 1) float32."""
    if embedding.dtype != jnp.float32:
        embedding = embedding.astype(jnp.float32)
    # action is passed through as-is (int or float); the cast happens in-kernel.
    B, E = embedding.shape
    A = action.shape[1]
    w1_emb, w1_act, b1, w2_row, b2 = fused_params
    H2 = w1_emb.shape[1]

    TB = _select_batch_tile(B, batch_tile)
    grid = (pl.cdiv(B, TB),)

    def const_spec(shape):
        # Constant index_map -> block never changes -> stays VMEM-resident.
        return pl.BlockSpec(shape, lambda i: (0, 0))

    # MXU first layer + VPU second-layer multiply + 2 masked lane reduces.
    flops = 2 * B * (E + A) * H2 + 4 * B * H2
    transcendentals = 2 * B * H2                      # exp + log1p per hidden elem
    # Lane-padded byte counts (emb/act/out blocks all pad to 128 lanes).
    bytes_accessed = 4 * B * (3 * _LANE) + 4 * ((E + A) * H2 + 3 * H2 + 2)

    out = pl.pallas_call(
        advantage_critic_kernel,
        out_shape=jax.ShapeDtypeStruct((B, 2), jnp.float32),
        grid=grid,
        in_specs=[
            pl.BlockSpec((TB, E), lambda i: (i, 0)),
            pl.BlockSpec((TB, A), lambda i: (i, 0)),
            const_spec(w1_emb.shape),
            const_spec(w1_act.shape),
            const_spec(b1.shape),
            const_spec(w2_row.shape),
            const_spec(b2.shape),
        ],
        out_specs=pl.BlockSpec((TB, 2), lambda i: (i, 0)),
        compiler_params=pltpu.CompilerParams(
            dimension_semantics=("parallel",)),
        cost_estimate=pl.CostEstimate(
            flops=flops,
            transcendentals=transcendentals,
            bytes_accessed=bytes_accessed),
    )(embedding, action, w1_emb, w1_act, b1, w2_row, b2)

    # Split the lane-packed (B, 2) slab once into the module's two (B, 1) outputs.
    state_value, action_value = jnp.split(out, 2, axis=1)
    return state_value, action_value


def init_params(key, embedding_dim, action_dim, hidden=HIDDEN_PER_HEAD):
    """Deterministic synthetic init. Weights stored as (in, out); bias as (1, out)."""
    ks = jax.random.split(key, 8)

    def lin(kw, kb, fan_in, fan_out):
        bound = 1.0 / jnp.sqrt(fan_in)
        w = jax.random.uniform(kw, (fan_in, fan_out), jnp.float32, -bound, bound)
        b = jax.random.uniform(kb, (1, fan_out), jnp.float32, -bound, bound)
        return w, b

    w1s, b1s = lin(ks[0], ks[1], embedding_dim, hidden)
    w2s, b2s = lin(ks[2], ks[3], hidden, 1)
    w1a, b1a = lin(ks[4], ks[5], embedding_dim + action_dim, hidden)
    w2a, b2a = lin(ks[6], ks[7], hidden, 1)
    return (w1s, b1s, w2s, b2s, w1a, b1a, w2a, b2a)


if __name__ == "__main__":
    embedding_dim = 16
    action_dim = 4
    batch = 8

    key = jax.random.PRNGKey(0)
    k_emb, k_act, k_par = jax.random.split(key, 3)

    embedding = jax.random.normal(k_emb, (batch, embedding_dim), jnp.float32)
    # action.float() in the torch module -> integer-ish actions cast to float
    action = jax.random.randint(k_act, (batch, action_dim), 0, 2).astype(jnp.int32)

    params = init_params(k_par, embedding_dim, action_dim)
    fused = pack_params(params, embedding_dim, action_dim)

    state_value, action_value = advantage_critic_forward(embedding, action, fused)
    jax.block_until_ready((state_value, action_value))

    # Reference check in plain JAX (unfused, matches the torch module semantics).
    def ref_mlp(x, w1, b1, w2, b2):
        h = jax.nn.softplus(x @ w1 + b1)
        return h @ w2 + b2

    (w1s, b1s, w2s, b2s, w1a, b1a, w2a, b2a) = params
    emb_act = jnp.concatenate([embedding, action.astype(jnp.float32)], axis=-1)
    sv_ref = ref_mlp(embedding, w1s, b1s, w2s, b2s)
    av_ref = ref_mlp(emb_act, w1a, b1a, w2a, b2a)

    assert state_value.shape == (batch, 1) and action_value.shape == (batch, 1)
    assert jnp.allclose(state_value, sv_ref, atol=1e-5)
    assert jnp.allclose(action_value, av_ref, atol=1e-5)

    # TODO(synk): update()/MSELoss are training-time ops, intentionally not kernelized.
    print("KERNEL_OK")
</pallas_src>

<mosaic_0001>
module attributes {stable_mosaic.version = 11 : i64} {
  func.func @advantage_critic_kernel(%arg0: i32, %arg1: memref<8x16xf32, #tpu.memory_space<vmem>>, %arg2: memref<8x4xi32, #tpu.memory_space<vmem>>, %arg3: memref<16x128xf32, #tpu.memory_space<vmem>>, %arg4: memref<4x128xf32, #tpu.memory_space<vmem>>, %arg5: memref<1x128xf32, #tpu.memory_space<vmem>>, %arg6: memref<1x128xf32, #tpu.memory_space<vmem>>, %arg7: memref<1x2xf32, #tpu.memory_space<vmem>>, %arg8: memref<8x2xf32, #tpu.memory_space<vmem>>) attributes {dimension_semantics = [#tpu.dimension_semantics<parallel>], iteration_bounds = array<i64: 1>, scalar_prefetch = 0 : i64, scratch_operands = 0 : i64, tpu.core_type = #tpu.core_type<tc>, window_params = [{transform_indices = @transform_0, window_bounds = array<i64: 8, 16>}, {transform_indices = @transform_1, window_bounds = array<i64: 8, 4>}, {pipeline_mode = #tpu.pipeline_mode<synchronous>, transform_indices = @transform_2, window_bounds = array<i64: 16, 128>}, {pipeline_mode = #tpu.pipeline_mode<synchronous>, transform_indices = @transform_3, window_bounds = array<i64: 4, 128>}, {pipeline_mode = #tpu.pipeline_mode<synchronous>, transform_indices = @transform_4, window_bounds = array<i64: 1, 128>}, {pipeline_mode = #tpu.pipeline_mode<synchronous>, transform_indices = @transform_5, window_bounds = array<i64: 1, 128>}, {pipeline_mode = #tpu.pipeline_mode<synchronous>, transform_indices = @transform_6, window_bounds = array<i64: 1, 2>}, {transform_indices = @transform_7, window_bounds = array<i64: 8, 2>}]} {
    %c0 = arith.constant 0 : index
    %c0_0 = arith.constant 0 : index
    %0 = vector.load %arg2[%c0, %c0_0] : memref<8x4xi32, #tpu.memory_space<vmem>>, vector<8x4xi32>
    %1 = arith.sitofp %0 : vector<8x4xi32> to vector<8x4xf32>
    %c0_1 = arith.constant 0 : index
    %c0_2 = arith.constant 0 : index
    %2 = vector.load %arg1[%c0_1, %c0_2] : memref<8x16xf32, #tpu.memory_space<vmem>>, vector<8x16xf32>
    %c0_3 = arith.constant 0 : index
    %c0_4 = arith.constant 0 : index
    %3 = vector.load %arg3[%c0_3, %c0_4] : memref<16x128xf32, #tpu.memory_space<vmem>>, vector<16x128xf32>
    %cst = arith.constant dense<0.000000e+00> : vector<8x128xf32>
    %4 = tpu.matmul %2, %3, %cst {dimension_numbers = #tpu.dot_dimension_numbers<[1], [0], [0], [1], [0, 0, 1, 1], [], []>} : vector<8x16xf32>, vector<16x128xf32>, vector<8x128xf32> -> vector<8x128xf32>
    %c0_5 = arith.constant 0 : index
    %c0_6 = arith.constant 0 : index
    %5 = vector.load %arg4[%c0_5, %c0_6] : memref<4x128xf32, #tpu.memory_space<vmem>>, vector<4x128xf32>
    %cst_7 = arith.constant dense<0.000000e+00> : vector<8x128xf32>
    %6 = tpu.matmul %1, %5, %cst_7 {dimension_numbers = #tpu.dot_dimension_numbers<[1], [0], [0], [1], [0, 0, 1, 1], [], []>} : vector<8x4xf32>, vector<4x128xf32>, vector<8x128xf32> -> vector<8x128xf32>
    %7 = arith.addf %4, %6 : vector<8x128xf32>
    %c0_8 = arith.constant 0 : index
    %c0_9 = arith.constant 0 : index
    %8 = vector.load %arg5[%c0_8, %c0_9] : memref<1x128xf32, #tpu.memory_space<vmem>>, vector<1x128xf32>
    %9 = vector.broadcast %8 : vector<1x128xf32> to vector<8x128xf32>
    %10 = arith.addf %7, %9 : vector<8x128xf32>
    %cst_10 = arith.constant 0.000000e+00 : f32
    %11 = vector.broadcast %cst_10 : f32 to vector<8x128xf32>
    %12 = arith.maximumf %10, %11 : vector<8x128xf32>
    %13 = math.absf %10 : vector<8x128xf32>
    %cst_11 = arith.constant 0.000000e+00 : f32
    %14 = vector.broadcast %cst_11 : f32 to vector<8x128xf32>
    %15 = arith.subf %14, %13 : vector<8x128xf32>
    %16 = math.exp %15 : vector<8x128xf32>
    %17 = math.log1p %16 : vector<8x128xf32>
    %18 = arith.addf %12, %17 : vector<8x128xf32>
    %c0_12 = arith.constant 0 : index
    %c0_13 = arith.constant 0 : index
    %19 = vector.load %arg6[%c0_12, %c0_13] : memref<1x128xf32, #tpu.memory_space<vmem>>, vector<1x128xf32>
    %20 = vector.broadcast %19 : vector<1x128xf32> to vector<8x128xf32>
    %21 = arith.mulf %18, %20 : vector<8x128xf32>
    %22 = tpu.iota {dimensions = array<i32: 1>} : vector<8x128xi32>
    %c64_i32 = arith.constant 64 : i32
    %23 = vector.broadcast %c64_i32 : i32 to vector<8x128xi32>
    %24 = arith.cmpi slt, %22, %23 : vector<8x128xi32>
    %cst_14 = arith.constant 0.000000e+00 : f32
    %25 = vector.broadcast %cst_14 : f32 to vector<8x128xf32>
    %26 = arith.select %24, %21, %25 : vector<8x128xi1>, vector<8x128xf32>
    %cst_15 = arith.constant dense<0.000000e+00> : vector<8xf32>
    %27 = vector.multi_reduction <add>, %26, %cst_15 [1] : vector<8x128xf32> to vector<8xf32>
    %28 = vector.shape_cast %27 : vector<8xf32> to vector<8x1xf32>
    %cst_16 = arith.constant 0.000000e+00 : f32
    %29 = vector.broadcast %cst_16 : f32 to vector<8x128xf32>
    %30 = arith.select %24, %29, %21 : vector<8x128xi1>, vector<8x128xf32>
    %cst_17 = arith.constant dense<0.000000e+00> : vector<8xf32>
    %31 = vector.multi_reduction <add>, %30, %cst_17 [1] : vector<8x128xf32> to vector<8xf32>
    %32 = vector.shape_cast %31 : vector<8xf32> to vector<8x1xf32>
    %33 = tpu.iota {dimensions = array<i32: 1>} : vector<8x2xi32>
    %c0_i32 = arith.constant 0 : i32
    %34 = vector.broadcast %c0_i32 : i32 to vector<8x2xi32>
    %35 = arith.cmpi eq, %33, %34 : vector<8x2xi32>
    %36 = vector.shape_cast %28 : vector<8x1xf32> to vector<8x1xf32>
    %37 = vector.broadcast %36 : vector<8x1xf32> to vector<8x2xf32>
    %38 = vector.shape_cast %32 : vector<8x1xf32> to vector<8x1xf32>
    %39 = vector.broadcast %38 : vector<8x1xf32> to vector<8x2xf32>
    %40 = arith.select %35, %37, %39 : vector<8x2xi1>, vector<8x2xf32>
    %c0_18 = arith.constant 0 : index
    %c0_19 = arith.constant 0 : index
    %41 = vector.load %arg7[%c0_18, %c0_19] : memref<1x2xf32, #tpu.memory_space<vmem>>, vector<1x2xf32>
    %42 = vector.broadcast %41 : vector<1x2xf32> to vector<8x2xf32>
    %43 = arith.addf %40, %42 : vector<8x2xf32>
    %c0_20 = arith.constant 0 : index
    %c0_21 = arith.constant 0 : index
    %44 = vector.load %arg8[%c0_20, %c0_21] : memref<8x2xf32, #tpu.memory_space<vmem>>, vector<8x2xf32>
    tpu.vector_store %arg8[%c0_20, %c0_21], %43 {strides = array<i32>} : memref<8x2xf32, #tpu.memory_space<vmem>>, vector<8x2xf32>,
    return
  }
  func.func @transform_0(%arg0: i32) -> (i32, i32) {
    %c0_i32 = arith.constant 0 : i32
    %c0_i32_0 = arith.constant 0 : i32
    return %arg0, %c0_i32 : i32, i32
  }
  func.func @transform_1(%arg0: i32) -> (i32, i32) {
    %c0_i32 = arith.constant 0 : i32
    %c0_i32_0 = arith.constant 0 : i32
    return %arg0, %c0_i32 : i32, i32
  }
  func.func @transform_2(%arg0: i32) -> (i32, i32) {
    %c0_i32 = arith.constant 0 : i32
    %c0_i32_0 = arith.constant 0 : i32
    %c0_i32_1 = arith.constant 0 : i32
    return %c0_i32, %c0_i32_0 : i32, i32
  }
  func.func @transform_3(%arg0: i32) -> (i32, i32) {
    %c0_i32 = arith.constant 0 : i32
    %c0_i32_0 = arith.constant 0 : i32
    %c0_i32_1 = arith.constant 0 : i32
    return %c0_i32, %c0_i32_0 : i32, i32
  }
  func.func @transform_4(%arg0: i32) -> (i32, i32) {
    %c0_i32 = arith.constant 0 : i32
    %c0_i32_0 = arith.constant 0 : i32
    %c0_i32_1 = arith.constant 0 : i32
    return %c0_i32, %c0_i32_0 : i32, i32
  }
  func.func @transform_5(%arg0: i32) -> (i32, i32) {
    %c0_i32 = arith.constant 0 : i32
    %c0_i32_0 = arith.constant 0 : i32
    %c0_i32_1 = arith.constant 0 : i32
    return %c0_i32, %c0_i32_0 : i32, i32
  }
  func.func @transform_6(%arg0: i32) -> (i32, i32) {
    %c0_i32 = arith.constant 0 : i32
    %c0_i32_0 = arith.constant 0 : i32
    %c0_i32_1 = arith.constant 0 : i32
    return %c0_i32, %c0_i32_0 : i32, i32
  }
  func.func @transform_7(%arg0: i32) -> (i32, i32) {
    %c0_i32 = arith.constant 0 : i32
    %c0_i32_0 = arith.constant 0 : i32
    return %arg0, %c0_i32 : i32, i32
  }
}

</mosaic_0001>

<bundles_post_ra>
// kernel: tpu_custom_call.1
= control target key start
LH: loop header
LB: loop body
LE: loop exit
PB: predicated region body
PF: predicated region fallthrough
CT: control target
= control target key end

     0   :  { %12 = vsyncpa [#allocation3], 0  ;;  %s187_s27 = smov [#allocation2]   ;;  %s188_s29 = smov 128   ;;  %s254_s0 = inlined_call_operand.vmem [shape: f32[8,16], index: 0, kind: input, shape index: {}]   ;;  %s255_s1 = inlined_call_operand.vmem [shape: s32[8,4], index: 1, kind: input, shape index: {}]   ;;  %s256_s2 = inlined_call_operand.hbm [shape: f32[16,128], index: 2, kind: input, shape index: {}]   ;;  %s257_s3 = inlined_call_operand.vmem [shape: f32[4,128], index: 3, kind: input, shape index: {}]   ;;  %s258_s4 = inlined_call_operand.vmem [shape: f32[1,128], index: 4, kind: input, shape index: {}]   ;;  %s259_s5 = inlined_call_operand.vmem [shape: f32[1,128], index: 5, kind: input, shape index: {}]   ;;  %s260_s6 = inlined_call_operand.vmem [shape: f32[1,2], index: 6, kind: input, shape index: {}]   ;;  %s261_s7 = inlined_call_operand.vmem [shape: f32[8,2], index: 7, kind: output, shape index: {}]  }
   0x1   :  { %s21_s26 = sshll.u32 %s256_s2, 4  ;;  %s23_s28 = sshll.u32 %s187_s27, 4  ;;  %s22_s26 = int_to_ptr.hbm [resolvable:$true] %s21_s26  ;;  %s24_s28 = int_to_ptr.vmem [resolvable:$true] %s23_s28 }
   0x2   :  { %s189_s30 = smov 8  }
   0x3   :  { %29 = dma.hbm_to_vmem [thread:$0]  %s22_s26, 256, %s24_s28, [#allocation3], %s188_s29, %s188_s29, %s189_s30  }
   0x4   :  { %185 = dma.done.wait [#allocation3], 256  }
   0x5   :  { %186 = vsyncadd [#allocation3], 4294967040  ;;  %vm52_vm0 = vcmask 1043456   ;;  %v46_v0 = vld [vmem:[#allocation2 + $0x8] sm:$0xff]  ;;  %v47_v1 = vld [vmem:[%s257_s3] sm:$0xf]  ;;  %v125_v18 = vlaneseq }
   0x6   :  { %v45_v2 = vld [vmem:[#allocation2] sm:$0xff]  ;;  %94 = vmatpush.msra.mxu1 %v46_v0  ;;  %148 = vmatpush.msk.msra.mxu0 %vm52_vm0, %v47_v1  ;;  %vm48_vm1 = vcmask 31744   ;;  %vm76_vm2 = vcmask 130048   ;;  %vm141_vm6 = vcmask 15360  }
   0x7   :  { %v42_v3 = vld [vmem:[%s255_s1] sm:$0xff]  ;;  %v126_v23 = vand.u32 127, %v125_v18 }
   0x8   :  { %v44_v4 = vld [vmem:[%s254_s0] sm:$0xff]  ;;  %v43_v5 = vcvt.s32.f32 %v42_v3  ;;  %95 = vmatpush.msra.mxu1 %v45_v2 }
   0x9   :  { %150 = vmatmul.msk.f32.vlgmr.msra.gmra.mxu1 %vm76_vm2, %v44_v4  ;;  %v154_v6 = vld [vmem:[%s258_s4] ss:$0 sm:$0xff]  ;;  %vm127_vm4 = vcmp.lt.s32.totalorder %v126_v23, 64  ;;  %vm134_vm5 = vcmp.eq.s32.totalorder %v126_v23, 0 }
   0xa   :  { %149 = vmatmul.msk.f32.vlgmr.msra.gmra.mxu0 %vm48_vm1, %v43_v5  ;;  %v155_v25 = vld [vmem:[%s259_s5] ss:$0 sm:$0xff] }
   0xb   :  { %v156_v32 = vld [vmem:[%s260_s6] ss:$0 sm:$0xff] }
  0x86   :  { %v97_v8 = vpop.f32.mrf.mxu1 }
  0x87   :  { %v73_v7 = vpop.f32.mrf.mxu0 }
  0x88   :  { %v98_v9 = vadd.f32 %v97_v8, %v73_v7 }
  0x8a   :  { %v104_v10 = vadd.f32 %v154_v6, %v98_v9 }
  0x8c   :  { %v106_v11 = vand.u32 2147483647, %v104_v10  ;;  %v105_v24 = vmax.f32 %v104_v10, 0.0 }
  0x8e   :  { %v107_v12 = vsub.f32 0.0, %v106_v11 }
  0x90   :  { %v108_v13 = vmul.f32 1.442695, %v107_v12 }
  0x92   :  { %157 = vpow2.f32 %v108_v13 }
  0x98   :  { %v158_v14 = vpop.eup %157 }
  0x99   :  { %v110_v15 = vadd.f32 1.0, %v158_v14  ;;  %v113_v16 = vmul.f32 -0.5, %v158_v14  ;;  %v116_v19 = vand.u32 2147483647, %v158_v14 }
  0x9b   :  { %159 = vlog2.f32 %v110_v15  ;;  %v114_v17 = vadd.f32 1.0, %v113_v16  ;;  %vm117_vm3 = vcmp.lt.f32.partialorder %v116_v19, 0.0004427343 }
  0x9d   :  { %v115_v22 = vmul.f32 %v158_v14, %v114_v17 }
  0xa1   :  { %v160_v20 = vpop.eup %159 }
  0xa2   :  { %v112_v21 = vmul.f32 0.6931472, %v160_v20 }
  0xa4   :  { %v118_v26 = vsel %vm117_vm3, %v115_v22, %v112_v21 }
  0xa5   :  { %v119_v27 = vadd.f32 %v118_v26, %v105_v24 }
  0xa7   :  { %v124_v28 = vmul.f32 %v155_v25, %v119_v27 }
  0xa9   :  { %v128_v29 = vsel %vm127_vm4, %v124_v28, 0.0  ;;  %v131_v30 = vsel %vm127_vm4, 0.0, %v124_v28 }
  0xaa   :  { %129 = vadd.xlane.f32.xlu0 %v128_v29 }
  0xb2   :  { %132 = vadd.xlane.f32.xlu0 %v131_v30 }
 0x11d   :  { %v130_v31 = vpop.xlane.xlu0 %129 }
 0x125   :  { %v133_v33 = vpop.xlane.xlu0 %132 }
 0x126   :  { %v135_v34 = vsel %vm134_vm5, %v130_v31, %v133_v33 }
 0x127   :  { %v140_v35 = vadd.f32 %v156_v32, %v135_v34 }
 0x129   :  { %142 = vst.msk [vmem:[%s261_s7] sm:$0xff] %vm141_vm6, %v140_v35 }
 0x12a   :  { %147 = vsyncpa [#allocation3], 1 }

</bundles_post_ra>
